<compile_context>
chip_gen: v7x
topology: tpu7x:2x2x1
jax: 0.10.0
libtpu: 0.0.40
codegen_flags: <defaults>
</compile_context>

<pallas_src>
import jax
import jax.numpy as jnp
from jax.experimental import pallas as pl
from jax.experimental.pallas import tpu as pltpu


def neumf_kernel(ue_ref, ie_ref,
                 w1u_ref, w1i_ref, b1_ref,
                 w2_ref, b2_ref,
                 w3_ref, b3_ref,
                 wo_mlp_ref, wo_mf_ref, bo_ref,
                 out_ref):
    # ue/ie blocks are (TILE_B, 64) = [mlp_embedding | mf_embedding] per row.
    ue = ue_ref[...]
    ie = ie_ref[...]

    # ---- MLP tower ----
    # Layer 1: concat([user_mlp, item_mlp]) @ W1 + b1.  The concat is folded
    # into two matmuls; the MF columns of ue/ie are killed by zero-padded
    # weight rows, so no slicing/concat is needed inside the kernel.
    h = jnp.dot(ue, w1u_ref[...], preferred_element_type=jnp.float32)
    h = h + jnp.dot(ie, w1i_ref[...], preferred_element_type=jnp.float32)
    h = jnp.maximum(h + b1_ref[...], 0.0)
    # Layer 2
    h = jnp.maximum(
        jnp.dot(h, w2_ref[...], preferred_element_type=jnp.float32) + b2_ref[...], 0.0)
    # Layer 3
    h = jnp.maximum(
        jnp.dot(h, w3_ref[...], preferred_element_type=jnp.float32) + b3_ref[...], 0.0)

    # ---- Head (output Linear, out_features=1) ----
    # Replace the N=1 matmuls with VPU multiply + cross-lane reductions.
    # wo_mf_ref is zero over the MLP columns, so sum(ue*ie*wo_mf) is exactly the
    # MF tower (user_mf * item_mf) contracted with its head weights.
    logits = (jnp.sum(h * wo_mlp_ref[...], axis=-1, keepdims=True)
              + jnp.sum(ue * ie * wo_mf_ref[...], axis=-1, keepdims=True)
              + bo_ref[...])

    # ---- Sigmoid ----
    out_ref[...] = 1.0 / (1.0 + jnp.exp(-logits))


def neumf_forward(params, user_indices, item_indices, *, tile_b=2048):
    B = int(user_indices.shape[0])
    d_emb = params["user_table"].shape[1]     # 64 = mlp(32) + mf(32)
    d_mlp = params["w1"].shape[0] // 2        # 32
    l1 = params["w1"].shape[1]                # 32
    l2 = params["w2"].shape[1]                # 16
    l3 = params["w3"].shape[1]                # 8

    # --- choose batch tile (multiple of 8) and pad the batch to whole tiles ---
    tile_b = max(8, (tile_b // 8) * 8)
    tb = ((B + 7) // 8) * 8 if B <= tile_b else tile_b
    b_pad = ((B + tb - 1) // tb) * tb
    pad = b_pad - B
    if pad:
        user_indices = jnp.pad(user_indices, (0, pad))   # index 0 is valid
        item_indices = jnp.pad(item_indices, (0, pad))

    # --- 2 merged-row gathers instead of 4 separate table gathers ---
    ue = params["user_table"][user_indices]   # (b_pad, 64)
    ie = params["item_table"][item_indices]   # (b_pad, 64)

    # --- zero-pad layer-1 / head weights over the "other" embedding half so
    #     the kernel never slices or concatenates along lanes ---
    w1, wo = params["w1"], params["wo"]
    zpad = jnp.zeros((d_emb - d_mlp, l1), jnp.float32)
    w1u = jnp.concatenate([w1[:d_mlp], zpad], axis=0)              # (64, 32)
    w1i = jnp.concatenate([w1[d_mlp:], zpad], axis=0)              # (64, 32)
    wo_mlp = wo[:l3, :].T                                          # (1, 8)
    wo_mf = jnp.concatenate(
        [jnp.zeros((d_mlp, 1), jnp.float32), wo[l3:, :]], axis=0).T  # (1, 64)

    emb_spec = pl.BlockSpec((tb, d_emb), lambda i: (i, 0))
    res = lambda shape: pl.BlockSpec(shape, lambda i: (0, 0))  # VMEM-resident

    out = pl.pallas_call(
        neumf_kernel,
        out_shape=jax.ShapeDtypeStruct((b_pad, 1), jnp.float32),
        grid=(b_pad // tb,),
        in_specs=[
            emb_spec, emb_spec,
            res((d_emb, l1)), res((d_emb, l1)), res((1, l1)),
            res((l1, l2)), res((1, l2)),
            res((l2, l3)), res((1, l3)),
            res((1, l3)), res((1, d_emb)), res((1, 1)),
        ],
        out_specs=pl.BlockSpec((tb, 1), lambda i: (i, 0)),
        compiler_params=pltpu.CompilerParams(
            dimension_semantics=("parallel",),       # shard batch tiles across TCs (v7x)
            vmem_limit_bytes=32 * 1024 * 1024,       # explicit budget, safe on v7x
        ),
    )(ue, ie, w1u, w1i, params["b1"], params["w2"], params["b2"],
      params["w3"], params["b3"], wo_mlp, wo_mf, params["bo"])

    # matches PyTorch rating.squeeze()
    return jnp.squeeze(out, axis=-1)[:B]


def init_params(key, num_users, num_items,
                embedding_size_mf=32, layers=(64, 32, 16, 8)):
    factor_num_mlp = layers[0] // 2
    keys = jax.random.split(key, 6)

    def xavier_uniform(k, fan_in, fan_out):
        bound = jnp.sqrt(6.0 / (fan_in + fan_out))
        return jax.random.uniform(k, (fan_in, fan_out), jnp.float32,
                                  minval=-bound, maxval=bound)

    d_emb = factor_num_mlp + embedding_size_mf
    params = {
        # merged per-entity embedding tables: cols [0:32) MLP, [32:64) MF
        # (same normal(std=0.01) init as the four separate nn.Embedding tables)
        "user_table": 0.01 * jax.random.normal(keys[0], (num_users, d_emb), jnp.float32),
        "item_table": 0.01 * jax.random.normal(keys[1], (num_items, d_emb), jnp.float32),
        # fc layers (xavier-uniform weights, zero bias); stored as (in, out)
        "w1": xavier_uniform(keys[2], layers[0], layers[1]),
        "b1": jnp.zeros((1, layers[1]), jnp.float32),
        "w2": xavier_uniform(keys[3], layers[1], layers[2]),
        "b2": jnp.zeros((1, layers[2]), jnp.float32),
        "w3": xavier_uniform(keys[4], layers[2], layers[3]),
        "b3": jnp.zeros((1, layers[3]), jnp.float32),
        # output layer: (layers[-1] + mf_dim, 1)
        "wo": xavier_uniform(keys[5], layers[3] + embedding_size_mf, 1),
        "bo": jnp.zeros((1, 1), jnp.float32),
    }
    return params


def reference_forward(params, user_indices, item_indices):
    # Pure-JAX reference mirroring the PyTorch forward exactly.
    d_mlp = params["w1"].shape[0] // 2
    ue = params["user_table"][user_indices]
    ie = params["item_table"][item_indices]
    mlp = jnp.concatenate([ue[:, :d_mlp], ie[:, :d_mlp]], axis=-1)
    mf = ue[:, d_mlp:] * ie[:, d_mlp:]
    mlp = jax.nn.relu(mlp @ params["w1"] + params["b1"])
    mlp = jax.nn.relu(mlp @ params["w2"] + params["b2"])
    mlp = jax.nn.relu(mlp @ params["w3"] + params["b3"])
    vec = jnp.concatenate([mlp, mf], axis=-1)
    logits = vec @ params["wo"] + params["bo"]
    return jax.nn.sigmoid(logits).squeeze(-1)


if __name__ == "__main__":
    num_users, num_items = 50, 100

    key = jax.random.PRNGKey(0)
    pkey, ukey, ikey = jax.random.split(key, 3)
    params = init_params(pkey, num_users, num_items)

    # --- small batch: single tile ---
    B1 = 8
    u1 = jax.random.randint(ukey, (B1,), 0, num_users, dtype=jnp.int32)
    i1 = jax.random.randint(ikey, (B1,), 0, num_items, dtype=jnp.int32)
    out1 = jax.block_until_ready(neumf_forward(params, u1, i1))
    ref1 = jax.block_until_ready(reference_forward(params, u1, i1))
    assert out1.shape == (B1,), out1.shape
    assert jnp.allclose(out1, ref1, atol=1e-5, rtol=1e-5), (out1, ref1)

    # --- larger batch: exercises the grid (3 tiles) + tail padding ---
    B2 = 300
    u2 = jax.random.randint(jax.random.PRNGKey(1), (B2,), 0, num_users, dtype=jnp.int32)
    i2 = jax.random.randint(jax.random.PRNGKey(2), (B2,), 0, num_items, dtype=jnp.int32)
    out2 = jax.block_until_ready(neumf_forward(params, u2, i2, tile_b=128))
    ref2 = jax.block_until_ready(reference_forward(params, u2, i2))
    assert out2.shape == (B2,), out2.shape
    assert jnp.allclose(out2, ref2, atol=1e-5, rtol=1e-5), (out2, ref2)

    print("KERNEL_OK")
</pallas_src>

<mosaic_0001>
module attributes {stable_mosaic.version = 11 : i64} {
  func.func @neumf_kernel(%arg0: i32, %arg1: memref<8x64xf32, #tpu.memory_space<vmem>>, %arg2: memref<8x64xf32, #tpu.memory_space<vmem>>, %arg3: memref<64x32xf32, #tpu.memory_space<vmem>>, %arg4: memref<64x32xf32, #tpu.memory_space<vmem>>, %arg5: memref<1x32xf32, #tpu.memory_space<vmem>>, %arg6: memref<32x16xf32, #tpu.memory_space<vmem>>, %arg7: memref<1x16xf32, #tpu.memory_space<vmem>>, %arg8: memref<16x8xf32, #tpu.memory_space<vmem>>, %arg9: memref<1x8xf32, #tpu.memory_space<vmem>>, %arg10: memref<1x8xf32, #tpu.memory_space<vmem>>, %arg11: memref<1x64xf32, #tpu.memory_space<vmem>>, %arg12: memref<1x1xf32, #tpu.memory_space<vmem>>, %arg13: memref<8x1xf32, #tpu.memory_space<vmem>>) attributes {dimension_semantics = [#tpu.dimension_semantics<parallel>], iteration_bounds = array<i64: 1>, scalar_prefetch = 0 : i64, scratch_operands = 0 : i64, tpu.core_type = #tpu.core_type<tc>, window_params = [{transform_indices = @transform_0, window_bounds = array<i64: 8, 64>}, {transform_indices = @transform_1, window_bounds = array<i64: 8, 64>}, {pipeline_mode = #tpu.pipeline_mode<synchronous>, transform_indices = @transform_2, window_bounds = array<i64: 64, 32>}, {pipeline_mode = #tpu.pipeline_mode<synchronous>, transform_indices = @transform_3, window_bounds = array<i64: 64, 32>}, {pipeline_mode = #tpu.pipeline_mode<synchronous>, transform_indices = @transform_4, window_bounds = array<i64: 1, 32>}, {pipeline_mode = #tpu.pipeline_mode<synchronous>, transform_indices = @transform_5, window_bounds = array<i64: 32, 16>}, {pipeline_mode = #tpu.pipeline_mode<synchronous>, transform_indices = @transform_6, window_bounds = array<i64: 1, 16>}, {pipeline_mode = #tpu.pipeline_mode<synchronous>, transform_indices = @transform_7, window_bounds = array<i64: 16, 8>}, {pipeline_mode = #tpu.pipeline_mode<synchronous>, transform_indices = @transform_8, window_bounds = array<i64: 1, 8>}, {pipeline_mode = #tpu.pipeline_mode<synchronous>, transform_indices = @transform_9, window_bounds = array<i64: 1, 8>}, {pipeline_mode = #tpu.pipeline_mode<synchronous>, transform_indices = @transform_10, window_bounds = array<i64: 1, 64>}, {pipeline_mode = #tpu.pipeline_mode<synchronous>, transform_indices = @transform_11, window_bounds = array<i64: 1, 1>}, {transform_indices = @transform_12, window_bounds = array<i64: 8, 1>}]} {
    %c0 = arith.constant 0 : index
    %c0_0 = arith.constant 0 : index
    %0 = vector.load %arg1[%c0, %c0_0] : memref<8x64xf32, #tpu.memory_space<vmem>>, vector<8x64xf32>
    %c0_1 = arith.constant 0 : index
    %c0_2 = arith.constant 0 : index
    %1 = vector.load %arg2[%c0_1, %c0_2] : memref<8x64xf32, #tpu.memory_space<vmem>>, vector<8x64xf32>
    %c0_3 = arith.constant 0 : index
    %c0_4 = arith.constant 0 : index
    %2 = vector.load %arg3[%c0_3, %c0_4] : memref<64x32xf32, #tpu.memory_space<vmem>>, vector<64x32xf32>
    %cst = arith.constant dense<0.000000e+00> : vector<8x32xf32>
    %3 = tpu.matmul %0, %2, %cst {dimension_numbers = #tpu.dot_dimension_numbers<[1], [0], [0], [1], [0, 0, 1, 1], [], []>} : vector<8x64xf32>, vector<64x32xf32>, vector<8x32xf32> -> vector<8x32xf32>
    %c0_5 = arith.constant 0 : index
    %c0_6 = arith.constant 0 : index
    %4 = vector.load %arg4[%c0_5, %c0_6] : memref<64x32xf32, #tpu.memory_space<vmem>>, vector<64x32xf32>
    %cst_7 = arith.constant dense<0.000000e+00> : vector<8x32xf32>
    %5 = tpu.matmul %1, %4, %cst_7 {dimension_numbers = #tpu.dot_dimension_numbers<[1], [0], [0], [1], [0, 0, 1, 1], [], []>} : vector<8x64xf32>, vector<64x32xf32>, vector<8x32xf32> -> vector<8x32xf32>
    %6 = arith.addf %3, %5 : vector<8x32xf32>
    %c0_8 = arith.constant 0 : index
    %c0_9 = arith.constant 0 : index
    %7 = vector.load %arg5[%c0_8, %c0_9] : memref<1x32xf32, #tpu.memory_space<vmem>>, vector<1x32xf32>
    %8 = vector.broadcast %7 : vector<1x32xf32> to vector<8x32xf32>
    %9 = arith.addf %6, %8 : vector<8x32xf32>
    %cst_10 = arith.constant 0.000000e+00 : f32
    %10 = vector.broadcast %cst_10 : f32 to vector<8x32xf32>
    %11 = arith.maximumf %9, %10 : vector<8x32xf32>
    %c0_11 = arith.constant 0 : index
    %c0_12 = arith.constant 0 : index
    %12 = vector.load %arg6[%c0_11, %c0_12] : memref<32x16xf32, #tpu.memory_space<vmem>>, vector<32x16xf32>
    %cst_13 = arith.constant dense<0.000000e+00> : vector<8x16xf32>
    %13 = tpu.matmul %11, %12, %cst_13 {dimension_numbers = #tpu.dot_dimension_numbers<[1], [0], [0], [1], [0, 0, 1, 1], [], []>} : vector<8x32xf32>, vector<32x16xf32>, vector<8x16xf32> -> vector<8x16xf32>
    %c0_14 = arith.constant 0 : index
    %c0_15 = arith.constant 0 : index
    %14 = vector.load %arg7[%c0_14, %c0_15] : memref<1x16xf32, #tpu.memory_space<vmem>>, vector<1x16xf32>
    %15 = vector.broadcast %14 : vector<1x16xf32> to vector<8x16xf32>
    %16 = arith.addf %13, %15 : vector<8x16xf32>
    %cst_16 = arith.constant 0.000000e+00 : f32
    %17 = vector.broadcast %cst_16 : f32 to vector<8x16xf32>
    %18 = arith.maximumf %16, %17 : vector<8x16xf32>
    %c0_17 = arith.constant 0 : index
    %c0_18 = arith.constant 0 : index
    %19 = vector.load %arg8[%c0_17, %c0_18] : memref<16x8xf32, #tpu.memory_space<vmem>>, vector<16x8xf32>
    %cst_19 = arith.constant dense<0.000000e+00> : vector<8x8xf32>
    %20 = tpu.matmul %18, %19, %cst_19 {dimension_numbers = #tpu.dot_dimension_numbers<[1], [0], [0], [1], [0, 0, 1, 1], [], []>} : vector<8x16xf32>, vector<16x8xf32>, vector<8x8xf32> -> vector<8x8xf32>
    %c0_20 = arith.constant 0 : index
    %c0_21 = arith.constant 0 : index
    %21 = vector.load %arg9[%c0_20, %c0_21] : memref<1x8xf32, #tpu.memory_space<vmem>>, vector<1x8xf32>
    %22 = vector.broadcast %21 : vector<1x8xf32> to vector<8x8xf32>
    %23 = arith.addf %20, %22 : vector<8x8xf32>
    %cst_22 = arith.constant 0.000000e+00 : f32
    %24 = vector.broadcast %cst_22 : f32 to vector<8x8xf32>
    %25 = arith.maximumf %23, %24 : vector<8x8xf32>
    %c0_23 = arith.constant 0 : index
    %c0_24 = arith.constant 0 : index
    %26 = vector.load %arg10[%c0_23, %c0_24] : memref<1x8xf32, #tpu.memory_space<vmem>>, vector<1x8xf32>
    %27 = vector.broadcast %26 : vector<1x8xf32> to vector<8x8xf32>
    %28 = arith.mulf %25, %27 : vector<8x8xf32>
    %cst_25 = arith.constant dense<0.000000e+00> : vector<8xf32>
    %29 = vector.multi_reduction <add>, %28, %cst_25 [1] : vector<8x8xf32> to vector<8xf32>
    %30 = vector.shape_cast %29 : vector<8xf32> to vector<8x1xf32>
    %31 = arith.mulf %0, %1 : vector<8x64xf32>
    %c0_26 = arith.constant 0 : index
    %c0_27 = arith.constant 0 : index
    %32 = vector.load %arg11[%c0_26, %c0_27] : memref<1x64xf32, #tpu.memory_space<vmem>>, vector<1x64xf32>
    %33 = vector.broadcast %32 : vector<1x64xf32> to vector<8x64xf32>
    %34 = arith.mulf %31, %33 : vector<8x64xf32>
    %cst_28 = arith.constant dense<0.000000e+00> : vector<8xf32>
    %35 = vector.multi_reduction <add>, %34, %cst_28 [1] : vector<8x64xf32> to vector<8xf32>
    %36 = vector.shape_cast %35 : vector<8xf32> to vector<8x1xf32>
    %37 = arith.addf %30, %36 : vector<8x1xf32>
    %c0_29 = arith.constant 0 : index
    %c0_30 = arith.constant 0 : index
    %38 = vector.load %arg12[%c0_29, %c0_30] : memref<1x1xf32, #tpu.memory_space<vmem>>, vector<1x1xf32>
    %39 = vector.broadcast %38 : vector<1x1xf32> to vector<8x1xf32>
    %40 = arith.addf %37, %39 : vector<8x1xf32>
    %cst_31 = arith.constant 0.000000e+00 : f32
    %41 = vector.broadcast %cst_31 : f32 to vector<8x1xf32>
    %42 = arith.subf %41, %40 : vector<8x1xf32>
    %43 = math.exp %42 : vector<8x1xf32>
    %cst_32 = arith.constant 1.000000e+00 : f32
    %44 = vector.broadcast %cst_32 : f32 to vector<8x1xf32>
    %45 = arith.addf %44, %43 : vector<8x1xf32>
    %cst_33 = arith.constant 1.000000e+00 : f32
    %46 = vector.broadcast %cst_33 : f32 to vector<8x1xf32>
    %47 = arith.divf %46, %45 : vector<8x1xf32>
    %c0_34 = arith.constant 0 : index
    %c0_35 = arith.constant 0 : index
    %48 = vector.load %arg13[%c0_34, %c0_35] : memref<8x1xf32, #tpu.memory_space<vmem>>, vector<8x1xf32>
    tpu.vector_store %arg13[%c0_34, %c0_35], %47 {strides = array<i32>} : memref<8x1xf32, #tpu.memory_space<vmem>>, vector<8x1xf32>,
    return
  }
  func.func @transform_0(%arg0: i32) -> (i32, i32) {
    %c0_i32 = arith.constant 0 : i32
    %c0_i32_0 = arith.constant 0 : i32
    return %arg0, %c0_i32 : i32, i32
  }
  func.func @transform_1(%arg0: i32) -> (i32, i32) {
    %c0_i32 = arith.constant 0 : i32
    %c0_i32_0 = arith.constant 0 : i32
    return %arg0, %c0_i32 : i32, i32
  }
  func.func @transform_2(%arg0: i32) -> (i32, i32) {
    %c0_i32 = arith.constant 0 : i32
    %c0_i32_0 = arith.constant 0 : i32
    %c0_i32_1 = arith.constant 0 : i32
    return %c0_i32, %c0_i32_0 : i32, i32
  }
  func.func @transform_3(%arg0: i32) -> (i32, i32) {
    %c0_i32 = arith.constant 0 : i32
    %c0_i32_0 = arith.constant 0 : i32
    %c0_i32_1 = arith.constant 0 : i32
    return %c0_i32, %c0_i32_0 : i32, i32
  }
  func.func @transform_4(%arg0: i32) -> (i32, i32) {
    %c0_i32 = arith.constant 0 : i32
    %c0_i32_0 = arith.constant 0 : i32
    %c0_i32_1 = arith.constant 0 : i32
    return %c0_i32, %c0_i32_0 : i32, i32
  }
  func.func @transform_5(%arg0: i32) -> (i32, i32) {
    %c0_i32 = arith.constant 0 : i32
    %c0_i32_0 = arith.constant 0 : i32
    %c0_i32_1 = arith.constant 0 : i32
    return %c0_i32, %c0_i32_0 : i32, i32
  }
  func.func @transform_6(%arg0: i32) -> (i32, i32) {
    %c0_i32 = arith.constant 0 : i32
    %c0_i32_0 = arith.constant 0 : i32
    %c0_i32_1 = arith.constant 0 : i32
    return %c0_i32, %c0_i32_0 : i32, i32
  }
  func.func @transform_7(%arg0: i32) -> (i32, i32) {
    %c0_i32 = arith.constant 0 : i32
    %c0_i32_0 = arith.constant 0 : i32
    %c0_i32_1 = arith.constant 0 : i32
    return %c0_i32, %c0_i32_0 : i32, i32
  }
  func.func @transform_8(%arg0: i32) -> (i32, i32) {
    %c0_i32 = arith.constant 0 : i32
    %c0_i32_0 = arith.constant 0 : i32
    %c0_i32_1 = arith.constant 0 : i32
    return %c0_i32, %c0_i32_0 : i32, i32
  }
  func.func @transform_9(%arg0: i32) -> (i32, i32) {
    %c0_i32 = arith.constant 0 : i32
    %c0_i32_0 = arith.constant 0 : i32
    %c0_i32_1 = arith.constant 0 : i32
    return %c0_i32, %c0_i32_0 : i32, i32
  }
  func.func @transform_10(%arg0: i32) -> (i32, i32) {
    %c0_i32 = arith.constant 0 : i32
    %c0_i32_0 = arith.constant 0 : i32
    %c0_i32_1 = arith.constant 0 : i32
    return %c0_i32, %c0_i32_0 : i32, i32
  }
  func.func @transform_11(%arg0: i32) -> (i32, i32) {
    %c0_i32 = arith.constant 0 : i32
    %c0_i32_0 = arith.constant 0 : i32
    %c0_i32_1 = arith.constant 0 : i32
    return %c0_i32, %c0_i32_0 : i32, i32
  }
  func.func @transform_12(%arg0: i32) -> (i32, i32) {
    %c0_i32 = arith.constant 0 : i32
    %c0_i32_0 = arith.constant 0 : i32
    return %arg0, %c0_i32 : i32, i32
  }
}

</mosaic_0001>

<bundles_post_ra>
// kernel: tpu_custom_call.1
= control target key start
LH: loop header
LB: loop body
LE: loop exit
PB: predicated region body
PF: predicated region fallthrough
CT: control target
= control target key end

     0   :  { %v564_v0 = vmov 0.0|0.0   ;;  %vm565_vm0 = vmmov 0   ;;  %v566_v8 = vmov 0.0   ;;  %vm61_vm1 = vcmask 523264   ;;  %s732_s3 = inlined_call_operand.vmem [shape: f32[64,32], index: 3, kind: input, shape index: {}]   ;;  %s733_s2 = inlined_call_operand.vmem [shape: f32[64,32], index: 2, kind: input, shape index: {}]   ;;  %s734_s1 = inlined_call_operand.vmem [shape: f32[8,64], index: 1, kind: input, shape index: {}]   ;;  %s735_s0 = inlined_call_operand.vmem [shape: f32[8,64], index: 0, kind: input, shape index: {}]   ;;  %s736_s5 = inlined_call_operand.vmem [shape: f32[32,16], index: 5, kind: input, shape index: {}]   ;;  %s737_s4 = inlined_call_operand.vmem [shape: f32[1,32], index: 4, kind: input, shape index: {}]   ;;  %s738_s7 = inlined_call_operand.vmem [shape: f32[16,8], index: 7, kind: input, shape index: {}]   ;;  %s739_s6 = inlined_call_operand.vmem [shape: f32[1,16], index: 6, kind: input, shape index: {}]   ;;  %s740_s8 = inlined_call_operand.vmem [shape: f32[1,8], index: 8, kind: input, shape index: {}]   ;;  %s741_s9 = inlined_call_operand.vmem [shape: f32[1,8], index: 9, kind: input, shape index: {}]   ;;  %s742_s10 = inlined_call_operand.vmem [shape: f32[1,64], index: 10, kind: input, shape index: {}]   ;;  %s743_s11 = inlined_call_operand.<no memory space> [shape: f32[1,1], index: 11, kind: input, shape index: {}]   ;;  %s744_s12 = inlined_call_operand.vmem [shape: f32[8,1], index: 12, kind: output, shape index: {}]  }
   0x1   :  { %524 = vmatprep.subr.bf16.mxu0 %v564_v0  ;;  %536 = vmatprep.subr.bf16.mxu1 %v564_v0  ;;  %v53_v1 = vld [vmem:[%s732_s3] sm:$0xff]  ;;  %v54_v2 = vld [vmem:[%s732_s3 + $0x8] sm:$0xff]  ;;  %v55_v6 = vld [vmem:[%s732_s3 + $0x10] sm:$0xff]  ;;  %vm228_vm2 = vcmask 261120   ;;  %vm312_vm3 = vcmask 130048   ;;  %vm395_vm4 = vcmask 64512   ;;  %v17_v62 = vstv %s743_s11 }
   0x2   :  { %v45_v3 = vld [vmem:[%s733_s2] sm:$0xff]  ;;  %v525_v4 = vpack.c.bf16 %v54_v2, %v53_v1  ;;  %v46_v5 = vld [vmem:[%s733_s2 + $0x8] sm:$0xff]  ;;  %v56_v7 = vld [vmem:[%s732_s3 + $0x18] sm:$0xff]  ;;  %484 = vmatprep.mubr.msk.f32.mxu0 %vm565_vm0, %v566_v8  ;;  %503 = vmatprep.mubr.msk.f32.mxu1 %vm565_vm0, %v566_v8  ;;  %18 = vst [vmem:[#allocation2] sm:$0x1] %v17_v62  ;;  %vm426_vm5 = vcmask 7168  }
   0x3   :  { %v537_v9 = vpack.c.bf16 %v46_v5, %v45_v3  ;;  %v47_v10 = vld [vmem:[%s733_s2 + $0x10] sm:$0xff]  ;;  %v48_v11 = vld [vmem:[%s733_s2 + $0x18] sm:$0xff]  ;;  %v528_v12 = vpack.c.bf16 %v56_v7, %v55_v6  ;;  %v57_v14 = vld [vmem:[%s732_s3 + $0x20] sm:$0xff] }
   0x4   :  { %526 = vmatpush3.bf16.msra.mxu0 %v525_v4  ;;  %v540_v13 = vpack.c.bf16 %v48_v11, %v47_v10  ;;  %v58_v15 = vld [vmem:[%s732_s3 + $0x28] sm:$0xff]  ;;  %v49_v16 = vld [vmem:[%s733_s2 + $0x20] sm:$0xff]  ;;  %v59_v20 = vld [vmem:[%s732_s3 + $0x30] sm:$0xff] }
   0x5   :  { %538 = vmatpush3.bf16.msra.mxu1 %v537_v9  ;;  %527 = vmatprep.subr.bf16.mxu0 %v564_v0  ;;  %v50_v17 = vld [vmem:[%s733_s2 + $0x28] sm:$0xff]  ;;  %v531_v18 = vpack.c.bf16 %v58_v15, %v57_v14  ;;  %v60_v21 = vld [vmem:[%s732_s3 + $0x38] sm:$0xff]  ;;  %v51_v22 = vld [vmem:[%s733_s2 + $0x30] sm:$0xff] }
   0x6   :  { %539 = vmatprep.subr.bf16.mxu1 %v564_v0  ;;  %v543_v19 = vpack.c.bf16 %v50_v17, %v49_v16  ;;  %v52_v23 = vld [vmem:[%s733_s2 + $0x38] sm:$0xff]  ;;  %v534_v24 = vpack.c.bf16 %v60_v21, %v59_v20  ;;  %v44_v26 = vld [vmem:[%s734_s1] sm:$0xff]  ;;  %v218_v29 = vld [vmem:[%s736_s5 + $0x8] sm:$0xff] }
   0x7   :  { %v546_v25 = vpack.c.bf16 %v52_v23, %v51_v22  ;;  %v43_v27 = vld [vmem:[%s735_s0] sm:$0xff]  ;;  %v219_v31 = vld [vmem:[%s736_s5 + $0x10] sm:$0xff]  ;;  %v220_v32 = vld [vmem:[%s736_s5 + $0x18] sm:$0xff] }
   0x8   :  { %529 = vmatpush3.bf16.msra.mxu0 %v528_v12  ;;  %v217_v28 = vld [vmem:[%s736_s5] sm:$0xff]  ;;  %v552_v33 = vpack.c.bf16 %v220_v32, %v219_v31  ;;  %v304_v43 = vld [vmem:[%s738_s7 + $0x8] sm:$0xff]  ;;  %v399_v54 = vmul.f32 %v44_v26, %v43_v27 }
   0x9   :  { %541 = vmatpush3.bf16.msra.mxu1 %v540_v13  ;;  %530 = vmatprep.subr.bf16.mxu0 %v564_v0  ;;  %v549_v30 = vpack.c.bf16 %v218_v29, %v217_v28  ;;  %v434_v36 = vld [vmem:[%s737_s4] ss:$0 sm:$0xff] }
   0xa   :  { %542 = vmatprep.subr.bf16.mxu1 %v564_v0  ;;  %v303_v42 = vld [vmem:[%s738_s7] sm:$0xff] }
   0xb   :  { %v555_v44 = vpack.c.bf16 %v304_v43, %v303_v42  ;;  %v435_v45 = vld [vmem:[%s739_s6] ss:$0 sm:$0xff] }
   0xc   :  { %532 = vmatpush3.bf16.msra.mxu0 %v531_v18  ;;  %v437_v50 = vld [vmem:[%s740_s8] ss:$0 sm:$0xff] }
   0xd   :  { %544 = vmatpush3.bf16.msra.mxu1 %v543_v19  ;;  %533 = vmatprep.subr.bf16.mxu0 %v564_v0  ;;  %v439_v55 = vld [vmem:[%s741_s9] ss:$0 sm:$0xff] }
   0xe   :  { %545 = vmatprep.subr.bf16.mxu1 %v564_v0  ;;  %v440_v56 = vld [vmem:[%s742_s10] ss:$0 sm:$0xff] }
   0xf   :  { %v407_v59 = vmul.f32 %v440_v56, %v399_v54 }
  0x10   :  { %535 = vmatpush3.bf16.msra.mxu0 %v534_v24 }
  0x11   :  { %547 = vmatpush3.bf16.msra.mxu1 %v546_v25  ;;  %548 = vmatprep.subr.bf16.mxu0 %v564_v0  ;;  %v408_v61 = vsel %vm61_vm1, %v407_v59, 0.0 }
  0x12   :  { %554 = vmatprep.subr.bf16.mxu1 %v564_v0 }
  0x13   :  { %485 = vmatmul.mubr.msk.f32.vlgmr.msra.gmra.mrb[0].mxu0 %vm61_vm1, %v44_v26 }
  0x14   :  { %504 = vmatmul.mubr.msk.f32.vlgmr.msra.gmra.mrb[0].mxu1 %vm61_vm1, %v43_v27  ;;  %514 = vmatprep.mubr.msk.f32.mxu0 %vm565_vm0, %v566_v8 }
  0x15   :  { %521 = vmatprep.mubr.msk.f32.mxu1 %vm565_vm0, %v566_v8  ;;  %550 = vmatpush3.bf16.msra.mxu0 %v549_v30 }
  0x16   :  { %551 = vmatprep.subr.bf16.mxu0 %v564_v0  ;;  %556 = vmatpush3.bf16.msra.mxu1 %v555_v44  ;;  %v441_v0 = vld [vmem:[#allocation2] ss:$0 sm:$0xff] }
  0x19   :  { %553 = vmatpush3.bf16.msra.mxu0 %v552_v33 }
  0xe6   :  { %v131_v34 = vpop.f32.mrb[0].mxu0 }
  0xe7   :  { %v204_v35 = vpop.f32.mrb[0].mxu1  ;;  %v486_v37 = vpop.f32.mrb[1].mxu0 }
  0xe8   :  { %v205_v38 = vadd.f32 %v204_v35, %v131_v34  ;;  %v505_v39 = vpop.f32.mrb[1].mxu1 }
  0xea   :  { %v215_v40 = vadd.f32 %v434_v36, %v205_v38 }
  0xec   :  { %v216_v41 = vmax.f32 %v215_v40, 0.0 }
  0xee   :  { %515 = vmatmul.mubr.msk.f32.vlgmr.msra.gmra.mrb[2].mxu0 %vm228_vm2, %v216_v41 }
 0x1c1   :  { %v298_v46 = vpop.f32.mrb[2].mxu0 }
 0x1c2   :  { %v299_v47 = vadd.f32 %v435_v45, %v298_v46  ;;  %v516_v48 = vpop.f32.mrb[3].mxu0 }
 0x1c4   :  { %v302_v49 = vmax.f32 %v299_v47, 0.0 }
 0x1c6   :  { %522 = vmatmul.mubr.msk.f32.vlgmr.msra.gmra.mrb[2].mxu1 %vm312_vm3, %v302_v49 }
 0x299   :  { %v382_v51 = vpop.f32.mrb[2].mxu1 }
 0x29a   :  { %v383_v52 = vadd.f32 %v437_v50, %v382_v51  ;;  %v523_v53 = vpop.f32.mrb[3].mxu1 }
 0x29c   :  { %v386_v57 = vmax.f32 %v383_v52, 0.0 }
 0x29e   :  { %v394_v58 = vmul.f32 %v439_v55, %v386_v57 }
 0x2a0   :  { %v396_v60 = vsel %vm395_vm4, %v394_v58, 0.0 }
 0x2a1   :  { %397 = vadd.xlane.f32.xlu0 %v396_v60 }
 0x2a5   :  { %409 = vadd.xlane.f32.xlu0 %v408_v61 }
 0x32e   :  { %v398_v63 = vpop.xlane.xlu0 %397 }
 0x332   :  { %v410_v1 = vpop.xlane.xlu0 %409 }
 0x333   :  { %v411_v2 = vadd.f32 %v410_v1, %v398_v63 }
 0x335   :  { %v419_v3 = vadd.f32 %v441_v0, %v411_v2 }
 0x337   :  { %v420_v4 = vsub.f32 0.0, %v419_v3 }
 0x339   :  { %v421_v5 = vmul.f32 1.442695, %v420_v4 }
 0x33b   :  { %560 = vpow2.f32 %v421_v5 }
 0x345   :  { %v561_v6 = vpop.eup %560 }
 0x346   :  { %v423_v7 = vadd.f32 1.0, %v561_v6 }
 0x348   :  { %562 = vrcp.f32 %v423_v7 }
 0x352   :  { %v563_v8 = vpop.eup %562 }
 0x353   :  { %427 = vst.msk [vmem:[%s744_s12] sm:$0xff] %vm426_vm5, %v563_v8 }

</bundles_post_ra>
